<compile_context>
chip_gen: v7x
topology: tpu7x:2x2x1
jax: 0.10.0
libtpu: 0.0.40
codegen_flags: <defaults>
</compile_context>

<pallas_src>
import jax
import jax.numpy as jnp
import numpy as np
from jax.experimental import pallas as pl
from jax.experimental.pallas import tpu as pltpu

# --------------------------------------------------------------------------- #
# Static model configuration (mirrors the PyTorch module)
# --------------------------------------------------------------------------- #
BASE_CHANNELS = 4
N_FEATURES = 121        # conv stack reduces length 121 -> 1 (fc.in_features = 2*8*bc)
BATCH = 2
USE_FE = True           # exercise the frequency-encoding branch

_KERNELS = [11, 3, 3, 3, 3]
_STRIDES = [5, 2, 2, 1, 1]
_C_OUT = [BASE_CHANNELS, 2 * BASE_CHANNELS, 4 * BASE_CHANNELS,
          8 * BASE_CHANNELS, 8 * BASE_CHANNELS]
_C_IN = [1] + _C_OUT[:-1]


def _build_layer_cfgs():
    cfgs = []
    length = N_FEATURES
    for cin, cout, k, s in zip(_C_IN, _C_OUT, _KERNELS, _STRIDES):
        l_out = (length - k) // s + 1
        cfgs.append(dict(cin=cin, cout=cout, k=k, s=s, L_in=length, L_out=l_out))
        length = l_out
    return cfgs


LAYERS = _build_layer_cfgs()
assert LAYERS[-1]["L_out"] == 1     # required so fc.in_features == 2*8*base_channels
FC_IN = 2 * LAYERS[-1]["cout"]      # 64

# frequency-encoding constant (real part == imag part)
_ARR_FREQ = np.arange(0, N_FEATURES) * 0.1 + 3.0
FE_NORM = (_ARR_FREQ / _ARR_FREQ[-1]).astype(np.float32)            # (N,)

# layer-1 im2col gather indices (applied once in the wrapper on the raw input)
_IM2COL_IDX = (np.arange(LAYERS[0]["L_out"])[:, None] * LAYERS[0]["s"]
               + np.arange(LAYERS[0]["k"])[None, :])                # (23, 11)

# rows of the packed "tail" operand
_TAIL_BIAS_ROW = 0          # rows 0..4: folded biases of conv layers 1..5
_TAIL_FCW_ROW = 5           # row 5: fc weight (64 lanes)
_TAIL_FCB_ROW = 6           # row 6: fc bias  (1 lane)


# --------------------------------------------------------------------------- #
# Fused Pallas kernel: whole forward pass for ONE batch element
# --------------------------------------------------------------------------- #
def _fused_cnn_kernel(x1_ref, w1_ref, w2_ref, w3_ref, w4_ref, w5_ref,
                      tail_ref, out_ref, act_ref):
    """Entire CNN_baseline_complex_fe forward, VMEM-resident.

    x1_ref  : (23, 22)  layer-1 im2col'ed complex input ([re, im] per tap)
    w1_ref  : (22, 8)   layer-1 packed weight (2-D, consumed by one matmul)
    w2..w5  : (k, 2*C_in, 2*C_out) packed complex conv weights
    tail_ref: (8, 128)  rows 0..4 = folded biases [br-bi | br+bi] of layers 1..5,
                        row 5 = fc weight (64 lanes), row 6 = fc bias (lane 0)
    act_ref : (32, 128) f32 scratch holding the current activation, stored
              channels-last as [real channels | imag channels].
    """
    def bias(row, width):                              # static slice: zero-cost view
        return tail_ref[row:row + 1, 0:width]          # (1, width)

    # ---- conv block 1: single stacked real matmul + folded bias + complex ReLU
    c1 = LAYERS[0]
    y = jnp.dot(x1_ref[...], w1_ref[...], preferred_element_type=jnp.float32)
    y = jnp.maximum(y + bias(_TAIL_BIAS_ROW, 2 * c1["cout"]), 0.0)  # (23, 8)
    act_ref[0:c1["L_out"], 0:2 * c1["cout"]] = y

    # ---- conv blocks 2..5: strided window reads of the VMEM-resident activation,
    #      one stacked real matmul per tap, accumulated in f32.  All tap reads
    #      materialize as values before the in-place activation store.
    w_refs = (w2_ref, w3_ref, w4_ref, w5_ref)
    for li, (cfg, w_ref) in enumerate(zip(LAYERS[1:], w_refs)):
        cin, cout = cfg["cin"], cfg["cout"]
        k, s, l_out = cfg["k"], cfg["s"], cfg["L_out"]
        acc = None
        for j in range(k):                                         # static unroll
            rows = pl.ds(j, l_out) if s == 1 else pl.ds(j, l_out, stride=s)
            col = act_ref[rows, pl.ds(0, 2 * cin)]                 # (l_out, 2*cin)
            d = jnp.dot(col, w_ref[j], preferred_element_type=jnp.float32)
            acc = d if acc is None else acc + d
        y = jnp.maximum(acc + bias(_TAIL_BIAS_ROW + 1 + li, 2 * cout), 0.0)
        if li + 1 < len(w_refs):                                   # last layer stays in regs
            act_ref[0:l_out, 0:2 * cout] = y

    # ---- final nn.Linear(64 -> 1): VPU multiply + lane reduction.
    #      y is (1, 64) = [real_flat | imag_flat] (L_out == 1, channel-major).
    fcw = tail_ref[_TAIL_FCW_ROW:_TAIL_FCW_ROW + 1, 0:FC_IN]       # (1, 64)
    fcb = tail_ref[_TAIL_FCB_ROW:_TAIL_FCB_ROW + 1, 0:1]           # (1, 1)
    out_ref[...] = jnp.sum(y * fcw, axis=-1, keepdims=True) + fcb


# --------------------------------------------------------------------------- #
# One-time parameter packing (outside the per-step forward)
# --------------------------------------------------------------------------- #
def _pack_complex_conv(wr, wi, br, bi):
    """Pack one ComplexConv1d into stacked real-matmul operands.

    Returns
      w: (k, 2*C_in, 2*C_out) with per-tap block [[wr_j, wi_j], [-wi_j, wr_j]]
      b: (2*C_out,) = [br - bi | br + bi]
    so that, for channels-last activations a = [real | imag],
      sum_j a_window_j @ w[j] + b == [conv_real | conv_imag]
    (complexPyTorch apply_complex semantics).
    """
    c_out, c_in, k = wr.shape
    wr_t = jnp.transpose(wr, (2, 1, 0))             # (k, C_in, C_out)
    wi_t = jnp.transpose(wi, (2, 1, 0))
    top = jnp.concatenate([wr_t, wi_t], axis=2)     # rows: real input channels
    bot = jnp.concatenate([-wi_t, wr_t], axis=2)    # rows: imag input channels
    w = jnp.concatenate([top, bot], axis=1)         # (k, 2*C_in, 2*C_out)
    b = jnp.concatenate([br - bi, br + bi])         # (2*C_out,)
    return w, b


def pack_params(params):
    """One-time conversion of PyTorch-layout parameters into kernel operands."""
    ws = []
    tail = jnp.zeros((8, 128), jnp.float32)
    for li, cfg in enumerate(LAYERS, start=1):
        p = params[f"conv{li}"]
        w, b = _pack_complex_conv(p["wr"], p["wi"], p["br"], p["bi"])
        if li == 1:   # layer 1 consumes the wrapper's im2col'ed input -> 2-D weight
            w = w.reshape(cfg["k"] * 2 * cfg["cin"], 2 * cfg["cout"])   # (22, 8)
        ws.append(w)
        tail = tail.at[_TAIL_BIAS_ROW + li - 1, 0:b.shape[0]].set(b)
    tail = tail.at[_TAIL_FCW_ROW, 0:FC_IN].set(params["fc_w"].reshape(-1))
    tail = tail.at[_TAIL_FCB_ROW, 0].set(params["fc_b"][0])
    fe_add = params["fe_weight"].reshape(-1) * jnp.asarray(FE_NORM)     # (N,)
    return {"ws": tuple(ws), "tail": tail, "fe_add": fe_add}


# --------------------------------------------------------------------------- #
# Forward (single fused pallas_call)
# --------------------------------------------------------------------------- #
def _const_index_map(ndim):
    return lambda b: (0,) * ndim


@jax.jit
def forward(packed, x_real, x_imag):
    """x_real, x_imag: (B, 1, N_FEATURES) float32 (real/imag of the complex input)."""
    b_sz = x_real.shape[0]
    x = jnp.stack([x_real[:, 0, :], x_imag[:, 0, :]], axis=-1)     # (B, N, 2)
    if USE_FE:
        # x += weight * (fe + i*fe): same additive term on real and imag parts.
        x = x + packed["fe_add"][None, :, None]
    c1 = LAYERS[0]
    # Layer-1 im2col on the raw 1-channel input (tiny, once); per-tap order [re, im].
    x1 = x[:, _IM2COL_IDX, :].reshape(b_sz, c1["L_out"], c1["k"] * 2 * c1["cin"])

    ws = packed["ws"]
    operands = (x1,) + ws + (packed["tail"],)
    in_specs = ([pl.BlockSpec((None,) + x1.shape[1:], lambda b: (b, 0, 0))]
                + [pl.BlockSpec(a.shape, _const_index_map(a.ndim)) for a in ws]
                + [pl.BlockSpec((8, 128), _const_index_map(2))])

    grid_spec = pltpu.PrefetchScalarGridSpec(
        num_scalar_prefetch=0,
        grid=(b_sz,),                                              # one step per batch elem
        in_specs=in_specs,
        out_specs=pl.BlockSpec((None, 1, 1), lambda b: (b, 0, 0)),
        scratch_shapes=[pltpu.VMEM((32, 128), jnp.float32)],       # activation scratch
    )
    out = pl.pallas_call(
        _fused_cnn_kernel,
        out_shape=jax.ShapeDtypeStruct((b_sz, 1, 1), jnp.float32),
        grid_spec=grid_spec,
        compiler_params=pltpu.CompilerParams(
            dimension_semantics=("parallel",)),                    # v7x: batch over 2 TCs
    )(*operands)
    return out.reshape(b_sz, 1)


# --------------------------------------------------------------------------- #
# Deterministic synthetic parameters (PyTorch-module shapes) + pure-JAX reference
# --------------------------------------------------------------------------- #
def init_params(key):
    params = {}
    for li, cfg in enumerate(LAYERS, start=1):
        key, k1, k2, k3, k4 = jax.random.split(key, 5)
        cin, cout, k = cfg["cin"], cfg["cout"], cfg["k"]
        scale = 1.0 / np.sqrt(cin * k)
        params[f"conv{li}"] = dict(
            wr=scale * jax.random.normal(k1, (cout, cin, k), jnp.float32),
            wi=scale * jax.random.normal(k2, (cout, cin, k), jnp.float32),
            br=scale * jax.random.normal(k3, (cout,), jnp.float32),
            bi=scale * jax.random.normal(k4, (cout,), jnp.float32),
        )
    key, k1, k2, k3 = jax.random.split(key, 4)
    params["fc_w"] = (1.0 / np.sqrt(FC_IN)) * jax.random.normal(k1, (FC_IN, 1), jnp.float32)
    params["fc_b"] = (1.0 / np.sqrt(FC_IN)) * jax.random.normal(k2, (1,), jnp.float32)
    # self.weight = nn.Parameter(torch.randn(n_features)[None,:].unsqueeze(1)) -> (1,1,N)
    params["fe_weight"] = jax.random.normal(k3, (1, 1, N_FEATURES), jnp.float32)
    return params


def _im2col_ref(x, k, stride):
    b_sz, c, length = x.shape
    l_out = (length - k) // stride + 1
    idx = np.arange(l_out)[:, None] * stride + np.arange(k)[None, :]
    patches = x[:, :, idx]                             # (B, C, L_out, k)
    patches = jnp.transpose(patches, (0, 2, 1, 3))     # (B, L_out, C, k)
    return patches.reshape(b_sz * l_out, c * k), l_out


def reference_forward(params, xr, xi):
    """Pure-JAX reference (complexPyTorch apply_complex + complex ReLU semantics)."""
    hi = jax.lax.Precision.HIGHEST
    if USE_FE:
        add = params["fe_weight"] * jnp.asarray(FE_NORM)[None, None, :]
        xr = xr + add
        xi = xi + add
    b_sz = xr.shape[0]
    for li, cfg in enumerate(LAYERS, start=1):
        p = params[f"conv{li}"]
        c_out, c_in, k = p["wr"].shape
        ar, l_out = _im2col_ref(xr, k, cfg["s"])
        ai, _ = _im2col_ref(xi, k, cfg["s"])
        wr = p["wr"].reshape(c_out, c_in * k).T
        wi = p["wi"].reshape(c_out, c_in * k).T
        real = (jnp.dot(ar, wr, precision=hi) - jnp.dot(ai, wi, precision=hi)
                + (p["br"] - p["bi"]))
        imag = (jnp.dot(ai, wr, precision=hi) + jnp.dot(ar, wi, precision=hi)
                + (p["br"] + p["bi"]))
        real = jnp.maximum(real, 0.0)
        imag = jnp.maximum(imag, 0.0)
        xr = real.reshape(b_sz, l_out, c_out).transpose(0, 2, 1)
        xi = imag.reshape(b_sz, l_out, c_out).transpose(0, 2, 1)
    feat = jnp.concatenate([xr.reshape(b_sz, -1), xi.reshape(b_sz, -1)], axis=1)
    return jnp.dot(feat, params["fc_w"], precision=hi) + params["fc_b"]


# --------------------------------------------------------------------------- #
if __name__ == "__main__":
    key = jax.random.PRNGKey(0)
    key, kx_r, kx_i = jax.random.split(key, 3)
    params = init_params(key)
    packed = pack_params(params)          # weights packed ONCE, not per forward

    x_real = jax.random.normal(kx_r, (BATCH, 1, N_FEATURES), jnp.float32)
    x_imag = jax.random.normal(kx_i, (BATCH, 1, N_FEATURES), jnp.float32)

    out = jax.block_until_ready(forward(packed, x_real, x_imag))
    ref = jax.block_until_ready(reference_forward(params, x_real, x_imag))

    assert out.shape == (BATCH, 1), out.shape
    assert bool(jnp.all(jnp.isfinite(out)))
    assert bool(jnp.allclose(out, ref, rtol=2e-2, atol=2e-2)), (out, ref)
    print("KERNEL_OK")
</pallas_src>

<mosaic_0001>
module attributes {stable_mosaic.version = 11 : i64} {
  func.func @_fused_cnn_kernel(%arg0: i32, %arg1: memref<1x23x22xf32, #tpu.memory_space<vmem>>, %arg2: memref<22x8xf32, #tpu.memory_space<vmem>>, %arg3: memref<3x8x16xf32, #tpu.memory_space<vmem>>, %arg4: memref<3x16x32xf32, #tpu.memory_space<vmem>>, %arg5: memref<3x32x64xf32, #tpu.memory_space<vmem>>, %arg6: memref<3x64x64xf32, #tpu.memory_space<vmem>>, %arg7: memref<8x128xf32, #tpu.memory_space<vmem>>, %arg8: memref<1x1x1xf32, #tpu.memory_space<vmem>>, %arg9: memref<32x128xf32, #tpu.memory_space<vmem>>) attributes {dimension_semantics = [#tpu.dimension_semantics<parallel>], iteration_bounds = array<i64: 2>, scalar_prefetch = 0 : i64, scratch_operands = 1 : i64, tpu.core_type = #tpu.core_type<tc>, window_params = [{transform_indices = @transform_0, window_bounds = array<i64: 1, 23, 22>}, {pipeline_mode = #tpu.pipeline_mode<synchronous>, transform_indices = @transform_1, window_bounds = array<i64: 22, 8>}, {pipeline_mode = #tpu.pipeline_mode<synchronous>, transform_indices = @transform_2, window_bounds = array<i64: 3, 8, 16>}, {pipeline_mode = #tpu.pipeline_mode<synchronous>, transform_indices = @transform_3, window_bounds = array<i64: 3, 16, 32>}, {pipeline_mode = #tpu.pipeline_mode<synchronous>, transform_indices = @transform_4, window_bounds = array<i64: 3, 32, 64>}, {pipeline_mode = #tpu.pipeline_mode<synchronous>, transform_indices = @transform_5, window_bounds = array<i64: 3, 64, 64>}, {pipeline_mode = #tpu.pipeline_mode<synchronous>, transform_indices = @transform_6, window_bounds = array<i64: 8, 128>}, {transform_indices = @transform_7, window_bounds = array<i64: 1, 1, 1>}]} {
    %c0 = arith.constant 0 : index
    %c0_0 = arith.constant 0 : index
    %c0_1 = arith.constant 0 : index
    %0 = vector.load %arg1[%c0, %c0_0, %c0_1] : memref<1x23x22xf32, #tpu.memory_space<vmem>>, vector<1x23x22xf32>
    %1 = vector.shape_cast %0 : vector<1x23x22xf32> to vector<23x22xf32>
    %c0_2 = arith.constant 0 : index
    %c0_3 = arith.constant 0 : index
    %2 = vector.load %arg2[%c0_2, %c0_3] : memref<22x8xf32, #tpu.memory_space<vmem>>, vector<22x8xf32>
    %cst = arith.constant dense<0.000000e+00> : vector<23x8xf32>
    %3 = tpu.matmul %1, %2, %cst {dimension_numbers = #tpu.dot_dimension_numbers<[1], [0], [0], [1], [0, 0, 1, 1], [], []>} : vector<23x22xf32>, vector<22x8xf32>, vector<23x8xf32> -> vector<23x8xf32>
    %c0_4 = arith.constant 0 : index
    %c0_5 = arith.constant 0 : index
    %4 = vector.load %arg7[%c0_4, %c0_5] : memref<8x128xf32, #tpu.memory_space<vmem>>, vector<1x8xf32>
    %5 = vector.broadcast %4 : vector<1x8xf32> to vector<23x8xf32>
    %6 = arith.addf %3, %5 : vector<23x8xf32>
    %cst_6 = arith.constant 0.000000e+00 : f32
    %7 = vector.broadcast %cst_6 : f32 to vector<23x8xf32>
    %8 = arith.maximumf %6, %7 : vector<23x8xf32>
    %c0_7 = arith.constant 0 : index
    %c0_8 = arith.constant 0 : index
    %9 = vector.load %arg9[%c0_7, %c0_8] : memref<32x128xf32, #tpu.memory_space<vmem>>, vector<23x8xf32>
    tpu.vector_store %arg9[%c0_7, %c0_8], %8 {strides = array<i32>} : memref<32x128xf32, #tpu.memory_space<vmem>>, vector<23x8xf32>,
    %c0_9 = arith.constant 0 : index
    %c0_10 = arith.constant 0 : index
    %10 = tpu.strided_load %arg9[%c0_9, %c0_10] {strides = array<i32: 2, 1>} : memref<32x128xf32, #tpu.memory_space<vmem>>, vector<11x8xf32>
    %c0_11 = arith.constant 0 : index
    %c0_12 = arith.constant 0 : index
    %c0_13 = arith.constant 0 : index
    %11 = vector.load %arg3[%c0_11, %c0_12, %c0_13] : memref<3x8x16xf32, #tpu.memory_space<vmem>>, vector<1x8x16xf32>
    %12 = vector.shape_cast %11 : vector<1x8x16xf32> to vector<8x16xf32>
    %cst_14 = arith.constant dense<0.000000e+00> : vector<11x16xf32>
    %13 = tpu.matmul %10, %12, %cst_14 {dimension_numbers = #tpu.dot_dimension_numbers<[1], [0], [0], [1], [0, 0, 1, 1], [], []>} : vector<11x8xf32>, vector<8x16xf32>, vector<11x16xf32> -> vector<11x16xf32>
    %c1 = arith.constant 1 : index
    %c0_15 = arith.constant 0 : index
    %14 = tpu.strided_load %arg9[%c1, %c0_15] {strides = array<i32: 2, 1>} : memref<32x128xf32, #tpu.memory_space<vmem>>, vector<11x8xf32>
    %c1_16 = arith.constant 1 : index
    %c0_17 = arith.constant 0 : index
    %c0_18 = arith.constant 0 : index
    %15 = vector.load %arg3[%c1_16, %c0_17, %c0_18] : memref<3x8x16xf32, #tpu.memory_space<vmem>>, vector<1x8x16xf32>
    %16 = vector.shape_cast %15 : vector<1x8x16xf32> to vector<8x16xf32>
    %cst_19 = arith.constant dense<0.000000e+00> : vector<11x16xf32>
    %17 = tpu.matmul %14, %16, %cst_19 {dimension_numbers = #tpu.dot_dimension_numbers<[1], [0], [0], [1], [0, 0, 1, 1], [], []>} : vector<11x8xf32>, vector<8x16xf32>, vector<11x16xf32> -> vector<11x16xf32>
    %18 = arith.addf %13, %17 : vector<11x16xf32>
    %c2 = arith.constant 2 : index
    %c0_20 = arith.constant 0 : index
    %19 = tpu.strided_load %arg9[%c2, %c0_20] {strides = array<i32: 2, 1>} : memref<32x128xf32, #tpu.memory_space<vmem>>, vector<11x8xf32>
    %c2_21 = arith.constant 2 : index
    %c0_22 = arith.constant 0 : index
    %c0_23 = arith.constant 0 : index
    %20 = vector.load %arg3[%c2_21, %c0_22, %c0_23] : memref<3x8x16xf32, #tpu.memory_space<vmem>>, vector<1x8x16xf32>
    %21 = vector.shape_cast %20 : vector<1x8x16xf32> to vector<8x16xf32>
    %cst_24 = arith.constant dense<0.000000e+00> : vector<11x16xf32>
    %22 = tpu.matmul %19, %21, %cst_24 {dimension_numbers = #tpu.dot_dimension_numbers<[1], [0], [0], [1], [0, 0, 1, 1], [], []>} : vector<11x8xf32>, vector<8x16xf32>, vector<11x16xf32> -> vector<11x16xf32>
    %23 = arith.addf %18, %22 : vector<11x16xf32>
    %c1_25 = arith.constant 1 : index
    %c0_26 = arith.constant 0 : index
    %24 = vector.load %arg7[%c1_25, %c0_26] : memref<8x128xf32, #tpu.memory_space<vmem>>, vector<1x16xf32>
    %25 = vector.broadcast %24 : vector<1x16xf32> to vector<11x16xf32>
    %26 = arith.addf %23, %25 : vector<11x16xf32>
    %cst_27 = arith.constant 0.000000e+00 : f32
    %27 = vector.broadcast %cst_27 : f32 to vector<11x16xf32>
    %28 = arith.maximumf %26, %27 : vector<11x16xf32>
    %c0_28 = arith.constant 0 : index
    %c0_29 = arith.constant 0 : index
    %29 = vector.load %arg9[%c0_28, %c0_29] : memref<32x128xf32, #tpu.memory_space<vmem>>, vector<11x16xf32>
    tpu.vector_store %arg9[%c0_28, %c0_29], %28 {strides = array<i32>} : memref<32x128xf32, #tpu.memory_space<vmem>>, vector<11x16xf32>,
    %c0_30 = arith.constant 0 : index
    %c0_31 = arith.constant 0 : index
    %30 = tpu.strided_load %arg9[%c0_30, %c0_31] {strides = array<i32: 2, 1>} : memref<32x128xf32, #tpu.memory_space<vmem>>, vector<5x16xf32>
    %c0_32 = arith.constant 0 : index
    %c0_33 = arith.constant 0 : index
    %c0_34 = arith.constant 0 : index
    %31 = vector.load %arg4[%c0_32, %c0_33, %c0_34] : memref<3x16x32xf32, #tpu.memory_space<vmem>>, vector<1x16x32xf32>
    %32 = vector.shape_cast %31 : vector<1x16x32xf32> to vector<16x32xf32>
    %cst_35 = arith.constant dense<0.000000e+00> : vector<5x32xf32>
    %33 = tpu.matmul %30, %32, %cst_35 {dimension_numbers = #tpu.dot_dimension_numbers<[1], [0], [0], [1], [0, 0, 1, 1], [], []>} : vector<5x16xf32>, vector<16x32xf32>, vector<5x32xf32> -> vector<5x32xf32>
    %c1_36 = arith.constant 1 : index
    %c0_37 = arith.constant 0 : index
    %34 = tpu.strided_load %arg9[%c1_36, %c0_37] {strides = array<i32: 2, 1>} : memref<32x128xf32, #tpu.memory_space<vmem>>, vector<5x16xf32>
    %c1_38 = arith.constant 1 : index
    %c0_39 = arith.constant 0 : index
    %c0_40 = arith.constant 0 : index
    %35 = vector.load %arg4[%c1_38, %c0_39, %c0_40] : memref<3x16x32xf32, #tpu.memory_space<vmem>>, vector<1x16x32xf32>
    %36 = vector.shape_cast %35 : vector<1x16x32xf32> to vector<16x32xf32>
    %cst_41 = arith.constant dense<0.000000e+00> : vector<5x32xf32>
    %37 = tpu.matmul %34, %36, %cst_41 {dimension_numbers = #tpu.dot_dimension_numbers<[1], [0], [0], [1], [0, 0, 1, 1], [], []>} : vector<5x16xf32>, vector<16x32xf32>, vector<5x32xf32> -> vector<5x32xf32>
    %38 = arith.addf %33, %37 : vector<5x32xf32>
    %c2_42 = arith.constant 2 : index
    %c0_43 = arith.constant 0 : index
    %39 = tpu.strided_load %arg9[%c2_42, %c0_43] {strides = array<i32: 2, 1>} : memref<32x128xf32, #tpu.memory_space<vmem>>, vector<5x16xf32>
    %c2_44 = arith.constant 2 : index
    %c0_45 = arith.constant 0 : index
    %c0_46 = arith.constant 0 : index
    %40 = vector.load %arg4[%c2_44, %c0_45, %c0_46] : memref<3x16x32xf32, #tpu.memory_space<vmem>>, vector<1x16x32xf32>
    %41 = vector.shape_cast %40 : vector<1x16x32xf32> to vector<16x32xf32>
    %cst_47 = arith.constant dense<0.000000e+00> : vector<5x32xf32>
    %42 = tpu.matmul %39, %41, %cst_47 {dimension_numbers = #tpu.dot_dimension_numbers<[1], [0], [0], [1], [0, 0, 1, 1], [], []>} : vector<5x16xf32>, vector<16x32xf32>, vector<5x32xf32> -> vector<5x32xf32>
    %43 = arith.addf %38, %42 : vector<5x32xf32>
    %c2_48 = arith.constant 2 : index
    %c0_49 = arith.constant 0 : index
    %44 = vector.load %arg7[%c2_48, %c0_49] : memref<8x128xf32, #tpu.memory_space<vmem>>, vector<1x32xf32>
    %45 = vector.broadcast %44 : vector<1x32xf32> to vector<5x32xf32>
    %46 = arith.addf %43, %45 : vector<5x32xf32>
    %cst_50 = arith.constant 0.000000e+00 : f32
    %47 = vector.broadcast %cst_50 : f32 to vector<5x32xf32>
    %48 = arith.maximumf %46, %47 : vector<5x32xf32>
    %c0_51 = arith.constant 0 : index
    %c0_52 = arith.constant 0 : index
    %49 = vector.load %arg9[%c0_51, %c0_52] : memref<32x128xf32, #tpu.memory_space<vmem>>, vector<5x32xf32>
    tpu.vector_store %arg9[%c0_51, %c0_52], %48 {strides = array<i32>} : memref<32x128xf32, #tpu.memory_space<vmem>>, vector<5x32xf32>,
    %c0_53 = arith.constant 0 : index
    %c0_54 = arith.constant 0 : index
    %50 = vector.load %arg9[%c0_53, %c0_54] : memref<32x128xf32, #tpu.memory_space<vmem>>, vector<3x32xf32>
    %c0_55 = arith.constant 0 : index
    %c0_56 = arith.constant 0 : index
    %c0_57 = arith.constant 0 : index
    %51 = vector.load %arg5[%c0_55, %c0_56, %c0_57] : memref<3x32x64xf32, #tpu.memory_space<vmem>>, vector<1x32x64xf32>
    %52 = vector.shape_cast %51 : vector<1x32x64xf32> to vector<32x64xf32>
    %cst_58 = arith.constant dense<0.000000e+00> : vector<3x64xf32>
    %53 = tpu.matmul %50, %52, %cst_58 {dimension_numbers = #tpu.dot_dimension_numbers<[1], [0], [0], [1], [0, 0, 1, 1], [], []>} : vector<3x32xf32>, vector<32x64xf32>, vector<3x64xf32> -> vector<3x64xf32>
    %c1_59 = arith.constant 1 : index
    %c0_60 = arith.constant 0 : index
    %54 = vector.load %arg9[%c1_59, %c0_60] : memref<32x128xf32, #tpu.memory_space<vmem>>, vector<3x32xf32>
    %c1_61 = arith.constant 1 : index
    %c0_62 = arith.constant 0 : index
    %c0_63 = arith.constant 0 : index
    %55 = vector.load %arg5[%c1_61, %c0_62, %c0_63] : memref<3x32x64xf32, #tpu.memory_space<vmem>>, vector<1x32x64xf32>
    %56 = vector.shape_cast %55 : vector<1x32x64xf32> to vector<32x64xf32>
    %cst_64 = arith.constant dense<0.000000e+00> : vector<3x64xf32>
    %57 = tpu.matmul %54, %56, %cst_64 {dimension_numbers = #tpu.dot_dimension_numbers<[1], [0], [0], [1], [0, 0, 1, 1], [], []>} : vector<3x32xf32>, vector<32x64xf32>, vector<3x64xf32> -> vector<3x64xf32>
    %58 = arith.addf %53, %57 : vector<3x64xf32>
    %c2_65 = arith.constant 2 : index
    %c0_66 = arith.constant 0 : index
    %59 = vector.load %arg9[%c2_65, %c0_66] : memref<32x128xf32, #tpu.memory_space<vmem>>, vector<3x32xf32>
    %c2_67 = arith.constant 2 : index
    %c0_68 = arith.constant 0 : index
    %c0_69 = arith.constant 0 : index
    %60 = vector.load %arg5[%c2_67, %c0_68, %c0_69] : memref<3x32x64xf32, #tpu.memory_space<vmem>>, vector<1x32x64xf32>
    %61 = vector.shape_cast %60 : vector<1x32x64xf32> to vector<32x64xf32>
    %cst_70 = arith.constant dense<0.000000e+00> : vector<3x64xf32>
    %62 = tpu.matmul %59, %61, %cst_70 {dimension_numbers = #tpu.dot_dimension_numbers<[1], [0], [0], [1], [0, 0, 1, 1], [], []>} : vector<3x32xf32>, vector<32x64xf32>, vector<3x64xf32> -> vector<3x64xf32>
    %63 = arith.addf %58, %62 : vector<3x64xf32>
    %c3 = arith.constant 3 : index
    %c0_71 = arith.constant 0 : index
    %64 = vector.load %arg7[%c3, %c0_71] : memref<8x128xf32, #tpu.memory_space<vmem>>, vector<1x64xf32>
    %65 = vector.broadcast %64 : vector<1x64xf32> to vector<3x64xf32>
    %66 = arith.addf %63, %65 : vector<3x64xf32>
    %cst_72 = arith.constant 0.000000e+00 : f32
    %67 = vector.broadcast %cst_72 : f32 to vector<3x64xf32>
    %68 = arith.maximumf %66, %67 : vector<3x64xf32>
    %c0_73 = arith.constant 0 : index
    %c0_74 = arith.constant 0 : index
    %69 = vector.load %arg9[%c0_73, %c0_74] : memref<32x128xf32, #tpu.memory_space<vmem>>, vector<3x64xf32>
    tpu.vector_store %arg9[%c0_73, %c0_74], %68 {strides = array<i32>} : memref<32x128xf32, #tpu.memory_space<vmem>>, vector<3x64xf32>,
    %c0_75 = arith.constant 0 : index
    %c0_76 = arith.constant 0 : index
    %70 = vector.load %arg9[%c0_75, %c0_76] : memref<32x128xf32, #tpu.memory_space<vmem>>, vector<1x64xf32>
    %c0_77 = arith.constant 0 : index
    %c0_78 = arith.constant 0 : index
    %c0_79 = arith.constant 0 : index
    %71 = vector.load %arg6[%c0_77, %c0_78, %c0_79] : memref<3x64x64xf32, #tpu.memory_space<vmem>>, vector<1x64x64xf32>
    %72 = vector.shape_cast %71 : vector<1x64x64xf32> to vector<64x64xf32>
    %cst_80 = arith.constant dense<0.000000e+00> : vector<1x64xf32>
    %73 = tpu.matmul %70, %72, %cst_80 {dimension_numbers = #tpu.dot_dimension_numbers<[1], [0], [0], [1], [0, 0, 1, 1], [], []>} : vector<1x64xf32>, vector<64x64xf32>, vector<1x64xf32> -> vector<1x64xf32>
    %c1_81 = arith.constant 1 : index
    %c0_82 = arith.constant 0 : index
    %74 = vector.load %arg9[%c1_81, %c0_82] : memref<32x128xf32, #tpu.memory_space<vmem>>, vector<1x64xf32>
    %c1_83 = arith.constant 1 : index
    %c0_84 = arith.constant 0 : index
    %c0_85 = arith.constant 0 : index
    %75 = vector.load %arg6[%c1_83, %c0_84, %c0_85] : memref<3x64x64xf32, #tpu.memory_space<vmem>>, vector<1x64x64xf32>
    %76 = vector.shape_cast %75 : vector<1x64x64xf32> to vector<64x64xf32>
    %cst_86 = arith.constant dense<0.000000e+00> : vector<1x64xf32>
    %77 = tpu.matmul %74, %76, %cst_86 {dimension_numbers = #tpu.dot_dimension_numbers<[1], [0], [0], [1], [0, 0, 1, 1], [], []>} : vector<1x64xf32>, vector<64x64xf32>, vector<1x64xf32> -> vector<1x64xf32>
    %78 = arith.addf %73, %77 : vector<1x64xf32>
    %c2_87 = arith.constant 2 : index
    %c0_88 = arith.constant 0 : index
    %79 = vector.load %arg9[%c2_87, %c0_88] : memref<32x128xf32, #tpu.memory_space<vmem>>, vector<1x64xf32>
    %c2_89 = arith.constant 2 : index
    %c0_90 = arith.constant 0 : index
    %c0_91 = arith.constant 0 : index
    %80 = vector.load %arg6[%c2_89, %c0_90, %c0_91] : memref<3x64x64xf32, #tpu.memory_space<vmem>>, vector<1x64x64xf32>
    %81 = vector.shape_cast %80 : vector<1x64x64xf32> to vector<64x64xf32>
    %cst_92 = arith.constant dense<0.000000e+00> : vector<1x64xf32>
    %82 = tpu.matmul %79, %81, %cst_92 {dimension_numbers = #tpu.dot_dimension_numbers<[1], [0], [0], [1], [0, 0, 1, 1], [], []>} : vector<1x64xf32>, vector<64x64xf32>, vector<1x64xf32> -> vector<1x64xf32>
    %83 = arith.addf %78, %82 : vector<1x64xf32>
    %c4 = arith.constant 4 : index
    %c0_93 = arith.constant 0 : index
    %84 = vector.load %arg7[%c4, %c0_93] : memref<8x128xf32, #tpu.memory_space<vmem>>, vector<1x64xf32>
    %85 = arith.addf %83, %84 : vector<1x64xf32>
    %cst_94 = arith.constant 0.000000e+00 : f32
    %86 = vector.broadcast %cst_94 : f32 to vector<1x64xf32>
    %87 = arith.maximumf %85, %86 : vector<1x64xf32>
    %c5 = arith.constant 5 : index
    %c0_95 = arith.constant 0 : index
    %88 = vector.load %arg7[%c5, %c0_95] : memref<8x128xf32, #tpu.memory_space<vmem>>, vector<1x64xf32>
    %c6 = arith.constant 6 : index
    %c0_96 = arith.constant 0 : index
    %89 = vector.load %arg7[%c6, %c0_96] : memref<8x128xf32, #tpu.memory_space<vmem>>, vector<1x1xf32>
    %90 = arith.mulf %87, %88 : vector<1x64xf32>
    %cst_97 = arith.constant dense<0.000000e+00> : vector<1xf32>
    %91 = vector.multi_reduction <add>, %90, %cst_97 [1] : vector<1x64xf32> to vector<1xf32>
    %92 = vector.shape_cast %91 : vector<1xf32> to vector<1x1xf32>
    %93 = arith.addf %92, %89 : vector<1x1xf32>
    %c0_98 = arith.constant 0 : index
    %c0_99 = arith.constant 0 : index
    %c0_100 = arith.constant 0 : index
    %94 = vector.load %arg8[%c0_98, %c0_99, %c0_100] : memref<1x1x1xf32, #tpu.memory_space<vmem>>, vector<1x1x1xf32>
    %95 = vector.shape_cast %94 : vector<1x1x1xf32> to vector<1x1xf32>
    %96 = vector.shape_cast %93 : vector<1x1xf32> to vector<1x1x1xf32>
    tpu.vector_store %arg8[%c0_98, %c0_99, %c0_100], %96 {strides = array<i32>} : memref<1x1x1xf32, #tpu.memory_space<vmem>>, vector<1x1x1xf32>,
    return
  }
  func.func @transform_0(%arg0: i32) -> (i32, i32, i32) {
    %c0_i32 = arith.constant 0 : i32
    %c0_i32_0 = arith.constant 0 : i32
    %c0_i32_1 = arith.constant 0 : i32
    return %arg0, %c0_i32, %c0_i32_0 : i32, i32, i32
  }
  func.func @transform_1(%arg0: i32) -> (i32, i32) {
    %c0_i32 = arith.constant 0 : i32
    %c0_i32_0 = arith.constant 0 : i32
    %c0_i32_1 = arith.constant 0 : i32
    return %c0_i32, %c0_i32_0 : i32, i32
  }
  func.func @transform_2(%arg0: i32) -> (i32, i32, i32) {
    %c0_i32 = arith.constant 0 : i32
    %c0_i32_0 = arith.constant 0 : i32
    %c0_i32_1 = arith.constant 0 : i32
    %c0_i32_2 = arith.constant 0 : i32
    return %c0_i32, %c0_i32_0, %c0_i32_1 : i32, i32, i32
  }
  func.func @transform_3(%arg0: i32) -> (i32, i32, i32) {
    %c0_i32 = arith.constant 0 : i32
    %c0_i32_0 = arith.constant 0 : i32
    %c0_i32_1 = arith.constant 0 : i32
    %c0_i32_2 = arith.constant 0 : i32
    return %c0_i32, %c0_i32_0, %c0_i32_1 : i32, i32, i32
  }
  func.func @transform_4(%arg0: i32) -> (i32, i32, i32) {
    %c0_i32 = arith.constant 0 : i32
    %c0_i32_0 = arith.constant 0 : i32
    %c0_i32_1 = arith.constant 0 : i32
    %c0_i32_2 = arith.constant 0 : i32
    return %c0_i32, %c0_i32_0, %c0_i32_1 : i32, i32, i32
  }
  func.func @transform_5(%arg0: i32) -> (i32, i32, i32) {
    %c0_i32 = arith.constant 0 : i32
    %c0_i32_0 = arith.constant 0 : i32
    %c0_i32_1 = arith.constant 0 : i32
    %c0_i32_2 = arith.constant 0 : i32
    return %c0_i32, %c0_i32_0, %c0_i32_1 : i32, i32, i32
  }
  func.func @transform_6(%arg0: i32) -> (i32, i32) {
    %c0_i32 = arith.constant 0 : i32
    %c0_i32_0 = arith.constant 0 : i32
    %c0_i32_1 = arith.constant 0 : i32
    return %c0_i32, %c0_i32_0 : i32, i32
  }
  func.func @transform_7(%arg0: i32) -> (i32, i32, i32) {
    %c0_i32 = arith.constant 0 : i32
    %c0_i32_0 = arith.constant 0 : i32
    %c0_i32_1 = arith.constant 0 : i32
    return %arg0, %c0_i32, %c0_i32_0 : i32, i32, i32
  }
}

</mosaic_0001>

<bundles_post_ra>
// kernel: forward.1
= control target key start
LH: loop header
LB: loop body
LE: loop exit
PB: predicated region body
PF: predicated region fallthrough
CT: control target
= control target key end

     0   :  { %s1860_s24 = smov 0   ;;  %s2111_s0 = inlined_call_operand.vmem [shape: f32[2,23,22], index: 0, kind: input, shape index: {}]   ;;  %s2112_s1 = inlined_call_operand.vmem [shape: f32[22,8], index: 1, kind: input, shape index: {}]   ;;  %s2113_s2 = inlined_call_operand.vmem [shape: f32[3,8,16], index: 2, kind: input, shape index: {}]   ;;  %s2114_s3 = inlined_call_operand.vmem [shape: f32[3,16,32], index: 3, kind: input, shape index: {}]   ;;  %s2115_s4 = inlined_call_operand.vmem [shape: f32[3,32,64], index: 4, kind: input, shape index: {}]   ;;  %s2116_s5 = inlined_call_operand.vmem [shape: f32[3,64,64], index: 5, kind: input, shape index: {}]   ;;  %s2117_s6 = inlined_call_operand.vmem [shape: f32[8,128], index: 6, kind: input, shape index: {}]   ;;  %s2118_s7 = inlined_call_operand.vmem [shape: f32[2,1,1], index: 7, kind: output, shape index: {}]  }
   0x1 LB: > { %s1459_s25 = sadd.s32 4294967295, %s1815_s24   ;;  %p1463_p0 = scmp.ge.s32.totalorder %s1815_s24, 1  ;;  %s1815_s24 = sphi %s1860_s24, %s17_s24  }
   0x2   : > { %p237_p1 = scmp.lt.s32.totalorder %s1815_s24, 3 }
   0x4   : > { %p238_p2 = pnand %p1463_p0, %p237_p1 }
   0x5   : > { %v278_v0 = vld [vmem:[%s2112_s1] sm:$0xff] (!%p238_p2)  ;;  %v279_v1 = vld [vmem:[%s2112_s1 + $0x8] sm:$0xff] (!%p238_p2)  ;;  %v1817_v2 = vmov (!%p238_p2), 0.0|0.0   ;;  %p267_p3 = scmp.lt.s32.totalorder (!%p238_p2), %s1459_s25, 1  ;;  %vm1818_vm0 = vmmov (!%p238_p2), 0   ;;  %v1819_v4 = vmov (!%p238_p2), 0.0  }
   0x6   : > { %241 = sbr.rel (%p238_p2) target bundleno = 1331 (0x533), region = 48  ;;  %1727 = vmatprep.subr.bf16.mxu0 (!%p238_p2), %v1817_v2  ;;  %v1728_v3 = vpack.c.bf16 (!%p238_p2), %v279_v1, %v278_v0  ;;  %1592 = vmatprep.mubr.msk.f32.mxu0 (!%p238_p2), %vm1818_vm0, %v1819_v4  ;;  %v280_v5 = vld [vmem:[%s2112_s1 + $0x10] sm:$0x3f] (!%p238_p2)  ;;  %vm296_vm1 = vcmask (!%p238_p2), 1045504   ;;  %vm286_vm2 = vcmask (!%p238_p2), 179200   ;;  %v1470_v9 = vld [vmem:[%s2113_s2 + $0x8] sm:$0xff] (!%p238_p2) }
   0x7   : > { %v391_v10 = vld [vmem:[%s2113_s2] sm:$0xff] (!%p238_p2)  ;;  %v1475_v11 = vld [vmem:[%s2113_s2 + $0x10] sm:$0xff] (!%p238_p2)  ;;  %vm383_vm3 = vcmask (!%p238_p2), 64512   ;;  %vm386_vm4 = vcmask (!%p238_p2), 63488   ;;  %v1480_v32 = vld [vmem:[%s2114_s3 + $0x18] sm:$0xff] (!%p238_p2)  ;;  %vm660_vm5 = vcmask (!%p238_p2), 124928  }
   0x8   : > { %1729 = vmatpush3.bf16.msra.mxu0 (!%p238_p2), %v1728_v3  ;;  %1606 = vmatprep.subr.mxu1 (!%p238_p2), %v391_v10  ;;  %v1465_v12 = vld [vmem:[%s2117_s6] ss:$0 sm:$0xff] (!%p238_p2)  ;;  %v1479_v31 = vld [vmem:[%s2114_s3 + $0x10] sm:$0xff] (!%p238_p2)  ;;  %v664_v35 = vld [vmem:[%s2114_s3 + $0x8] sm:$0xff] (!%p238_p2)  ;;  %vm658_vm6 = vcmask (!%p238_p2), 130048   ;;  %vm900_vm7 = vcmask (!%p238_p2), 258048  }
   0x9   : > { %1590 = vmatprep.subr.mxu0 (!%p238_p2), %v1819_v4  ;;  %1607 = vmatpush3.msra.mxu1 (!%p238_p2), %v391_v10  ;;  %v663_v33 = vld [vmem:[%s2114_s3] sm:$0xff] (!%p238_p2)  ;;  %v1731_v34 = vpack.c.bf16 (!%p238_p2), %v1480_v32, %v1479_v31  ;;  %v1484_v49 = vld [vmem:[%s2114_s3 + $0x28] sm:$0xff] (!%p238_p2)  ;;  %v1489_v59 = vld [vmem:[%s2115_s4 + $0x30] sm:$0xff] (!%p238_p2)  ;;  %vm913_vm8 = vcmask (!%p238_p2), 261120   ;;  %vm1147_vm9 = vcmask (!%p238_p2), 518144   ;;  %vm1168_vm10 = vcmask (!%p238_p2), 523264  }
   0xa   : > { %1611 = vmatprep.subr.mxu1 (!%p238_p2), %v1475_v11  ;;  %v1734_v36 = vpack.c.bf16 (!%p238_p2), %v664_v35, %v663_v33  ;;  %v1478_v40 = vld [vmem:[%s2117_s6 + $0x1] ss:$0 sm:$0xff] (!%p238_p2)  ;;  %v1488_v55 = vld [vmem:[%s2115_s4 + $0x28] sm:$0xff] (!%p238_p2)  ;;  %v1490_v60 = vld [vmem:[%s2115_s4 + $0x38] sm:$0xff] (!%p238_p2)  ;;  %vm1405_vm11 = vcmask (!%p238_p2), 516096   ;;  %vm1410_vm12 = vcmask (!%p238_p2), 0  }
   0xb   : > { %v1483_v48 = vld [vmem:[%s2114_s3 + $0x20] sm:$0xff] (!%p238_p2)  ;;  %v904_v58 = vld [vmem:[%s2115_s4 + $0x8] sm:$0xff] (!%p238_p2)  ;;  %v905_v62 = vld [vmem:[%s2115_s4 + $0x10] sm:$0xff] (!%p238_p2)  ;;  %v1743_v0 = vpack.c.bf16 (!%p238_p2), %v1490_v60, %v1489_v59 }
   0xc   : > { %1591 = vmatpush3.msk.msra.mxu0 (!%p238_p2), %vm296_vm1, %v280_v5  ;;  %v1737_v50 = vpack.c.bf16 (!%p238_p2), %v1484_v49, %v1483_v48  ;;  %v1487_v54 = vld [vmem:[%s2115_s4 + $0x20] sm:$0xff] (!%p238_p2)  ;;  %v906_v63 = vld [vmem:[%s2115_s4 + $0x18] sm:$0xff] (!%p238_p2)  ;;  %v1152_v33 = vld [vmem:[%s2116_s5 + $0x10] sm:$0xff] (!%p238_p2) }
   0xd   : > { %s2120_s25 = smov (!%p267_p3, %s1459_s25), 1  ;;  %1601 = vmatprep.subr.mxu0 %v1470_v9  ;;  %v903_v56 = vld [vmem:[%s2115_s4] sm:$0xff]  ;;  %v1740_v57 = vpack.c.bf16 %v1488_v55, %v1487_v54  ;;  %v1749_v1 = vpack.c.bf16 %v906_v63, %v905_v62  ;;  %v1502_v31 = vld [vmem:[%s2116_s5 + $0x58] sm:$0xff]  ;;  %v1510_v60 = vld [vmem:[%s2116_s5 + $0x88] sm:$0xff] }
   0xe   : > { %s1797_s9 = smul.u32 24, %s2120_s25  ;;  %v1746_v61 = vpack.c.bf16 %v904_v58, %v903_v56  ;;  %v1486_v10 = vld [vmem:[%s2117_s6 + $0x2] ss:$0 sm:$0xff]  ;;  %v1498_v54 = vld [vmem:[%s2117_s6 + $0x3] ss:$0 sm:$0xff]  ;;  %v1511_v62 = vld [vmem:[%s2116_s5 + $0x90] sm:$0xff]  ;;  %s274_s14 = scalar_lea.vmem %s2118_s7, %s2120_s25 }
   0xf   : > { %v1509_v59 = vld [vmem:[%s2116_s5 + $0x80] sm:$0xff]  ;;  %v1512_v63 = vld [vmem:[%s2116_s5 + $0x98] sm:$0xff] }
  0x10   : > { %s271_s12 = scalar_lea.vmem %s2111_s0, %s1797_s9 }
  0x11   : > { %v275_v6 = vld [vmem:[%s271_s12] sm:$0xff]  ;;  %v276_v7 = vld [vmem:[%s271_s12 + $0x8] sm:$0xff]  ;;  %v277_v8 = vld [vmem:[%s271_s12 + $0x10] sm:$0x7f] }
  0x12   : > { %1593 = vmatmul.mubr.msk.f32.vlgmr.msra.gmra.mrb[0].mxu0 %vm286_vm2, %v275_v6 }
  0x13   : > { %1595 = vmatprep.mubr.msk.f32.mxu0 %vm1818_vm0, %v1819_v4  ;;  %1602 = vmatpush3.msra.mxu0 %v1470_v9 }
  0x14   : > { %1733 = vmatprep.subr.bf16.mxu0 %v1817_v2 }
  0x16   : > { %1596 = vmatmul.mubr.msk.f32.gmra.mrb[2].mxu0 %vm286_vm2, %v276_v7 }
  0x17   : > { %1598 = vmatprep.mubr.msk.f32.mxu0 %vm1818_vm0, %v1819_v4 }
  0x1a   : > { %1599 = vmatmul.mubr.msk.f32.gmra.mrb[4].mxu0 %vm286_vm2, %v277_v8 }
  0xe5   : > { %v366_v13 = vpop.f32.mrb[0].mxu0 }
  0xe6   : > { %v367_v14 = vadd.f32 %v1465_v12, %v366_v13  ;;  %v1594_v15 = vpop.f32.mrb[1].mxu0 }
  0xe7   : > { %v1493_v15 = vld [vmem:[%s2115_s4 + $0x40] sm:$0xff] }
  0xe8   : > { %v380_v16 = vmax.f32 %v367_v14, 0.0 }
  0xe9   : > { %v371_v17 = vpop.f32.mrb[2].mxu0 }
  0xea   : > { %384 = vst.msk [vmem:[#allocation2] sm:$0xff] %vm383_vm3, %v380_v16  ;;  %v372_v18 = vadd.f32 %v1465_v12, %v371_v17  ;;  %v1597_v19 = vpop.f32.mrb[3].mxu0  ;;  %v1494_v16 = vld [vmem:[%s2115_s4 + $0x48] sm:$0xff] }
  0xeb   : > { %v1752_v17 = vpack.c.bf16 %v1494_v16, %v1493_v15  ;;  %v1496_v19 = vld [vmem:[%s2115_s4 + $0x58] sm:$0xff] }
  0xec   : > { %v381_v20 = vmax.f32 %v372_v18, 0.0  ;;  %v1495_v18 = vld [vmem:[%s2115_s4 + $0x50] sm:$0xff] }
  0xed   : > { %v376_v21 = vpop.f32.mrb[4].mxu0 }
  0xee   : > { %385 = vst.msk [vmem:[#allocation2 + $0x8] sm:$0xff] %vm383_vm3, %v381_v20  ;;  %v377_v22 = vadd.f32 %v1465_v12, %v376_v21  ;;  %v1600_v23 = vpop.f32.mrb[5].mxu0 }
  0xf0   : > { %v382_v24 = vmax.f32 %v377_v22, 0.0  ;;  %v1755_v22 = vpack.c.bf16 %v1496_v19, %v1495_v18 }
  0xf2   : > { %387 = vst.msk [vmem:[#allocation2 + $0x10] sm:$0x7f] %vm386_vm4, %v382_v24  ;;  %v1499_v24 = vld [vmem:[%s2116_s5 + $0x40] sm:$0xff] }
  0xf5   : > { %v393_v25 = vld [vmem:[#allocation2 + $0x1] ss:$2 sm:$0xff]  ;;  %v388_v26 = vld [vmem:[#allocation2] ss:$2 sm:$0xff] }
  0xf6   : > { %1603 = vmatprep.mubr.msk.f32.mxu0 %vm383_vm3, %v393_v25  ;;  %1608 = vmatprep.mubr.msk.f32.mxu1 %vm383_vm3, %v388_v26  ;;  %v1500_v25 = vld [vmem:[%s2116_s5 + $0x48] sm:$0xff] }
  0xf7   : > { %v1758_v26 = vpack.c.bf16 %v1500_v25, %v1499_v24  ;;  %v1403_v24 = vld [vmem:[%s2117_s6 + $0x6] sm:$0x1] }
  0xf9   : > { %v395_v27 = vld [vmem:[#allocation2 + $0x11] ss:$2 sm:$0x7]  ;;  %v390_v28 = vld [vmem:[#allocation2 + $0x10] ss:$2 sm:$0x7] }
  0xfa   : > { %1604 = vmatmul.mubr.msk.f32.vlgmr.msra.gmra.mrb[6].mxu0 %vm383_vm3, %v395_v27  ;;  %1609 = vmatmul.mubr.msk.f32.vlgmr.msra.gmra.mrb[0].mxu1 %vm383_vm3, %v390_v28  ;;  %v561_v29 = vld [vmem:[#allocation2 + $0x2] ss:$2 sm:$0xff]  ;;  %v563_v30 = vld [vmem:[#allocation2 + $0x12] ss:$2 sm:$0x7] }
  0xfb   : > { %1612 = vmatpush3.msra.mxu1 %v1475_v11  ;;  %1613 = vmatprep.mubr.msk.f32.mxu1 %vm383_vm3, %v561_v29  ;;  %v1150_v27 = vld [vmem:[%s2116_s5] sm:$0xff]  ;;  %v1151_v28 = vld [vmem:[%s2116_s5 + $0x8] sm:$0xff] }
  0xfc   : > { %1730 = vmatprep.subr.bf16.mxu1 %v1817_v2  ;;  %1627 = vmatprep.mubr.msk.f32.mxu0 %vm1818_vm0, %v1819_v4  ;;  %v1770_v29 = vpack.c.bf16 %v1151_v28, %v1150_v27 }
  0xfd   : > { %1735 = vmatpush3.bf16.msra.mxu0 %v1734_v36  ;;  %v1503_v36 = vld [vmem:[%s2116_s5 + $0x60] sm:$0xff] }
  0xfe   : > { %1739 = vmatprep.subr.bf16.mxu0 %v1817_v2 }
 0x102   : > { %1614 = vmatmul.mubr.msk.f32.vlgmr.msra.gmra.mrb[0].mxu1 %vm383_vm3, %v563_v30  ;;  %v1501_v30 = vld [vmem:[%s2116_s5 + $0x50] sm:$0xff] }
 0x103   : > { %1620 = vmatprep.mubr.msk.f32.mxu1 %vm1818_vm0, %v1819_v4  ;;  %1732 = vmatpush3.bf16.msra.mxu1 %v1731_v34  ;;  %v1761_v32 = vpack.c.bf16 %v1502_v31, %v1501_v30  ;;  %v1153_v34 = vld [vmem:[%s2116_s5 + $0x18] sm:$0xff] }
 0x104   : > { %1736 = vmatprep.subr.bf16.mxu1 %v1817_v2  ;;  %v1773_v35 = vpack.c.bf16 %v1153_v34, %v1152_v33 }
 0x1cd   : > { %v1605_v37 = vpop.f32.mrb[6].mxu0 }
 0x1ce   : > { %v470_v38 = vpop.f32.mrb[7].mxu0 }
 0x1d5   : > { %v1615_v39 = vpop.f32.mrb[0].mxu1 }
 0x1d6   : > { %v1793_v41 = vadd.f32 %v1615_v39, %v1605_v37  ;;  %v638_v42 = vpop.f32.mrb[1].mxu1  ;;  %v1504_v37 = vld [vmem:[%s2116_s5 + $0x68] sm:$0xff]  ;;  %v1154_v39 = vld [vmem:[%s2116_s5 + $0x20] sm:$0xff] }
 0x1d7   : > { %v1794_v43 = vadd.f32 %v638_v42, %v470_v38  ;;  %v1764_v38 = vpack.c.bf16 %v1504_v37, %v1503_v36 }
 0x1d8   : > { %v655_v44 = vadd.f32 %v1793_v41, %v1478_v40  ;;  %v1505_v41 = vld [vmem:[%s2116_s5 + $0x70] sm:$0xff] }
 0x1d9   : > { %v654_v45 = vadd.f32 %v1794_v43, %v1478_v40  ;;  %v1155_v40 = vld [vmem:[%s2116_s5 + $0x28] sm:$0xff]  ;;  %v1506_v43 = vld [vmem:[%s2116_s5 + $0x78] sm:$0xff] }
 0x1da   : > { %v657_v46 = vmax.f32 %v655_v44, 0.0  ;;  %v1776_v42 = vpack.c.bf16 %v1155_v40, %v1154_v39  ;;  %v1156_v44 = vld [vmem:[%s2116_s5 + $0x30] sm:$0xff] }
 0x1db   : > { %v656_v47 = vmax.f32 %v654_v45, 0.0  ;;  %v1157_v45 = vld [vmem:[%s2116_s5 + $0x38] sm:$0xff] }
 0x1dc   : > { %661 = vst.msk [vmem:[#allocation2 + $0x8] sm:$0x7] %vm660_vm5, %v657_v46  ;;  %v1767_v46 = vpack.c.bf16 %v1506_v43, %v1505_v41 }
 0x1dd   : > { %659 = vst.msk [vmem:[#allocation2] sm:$0xff] %vm658_vm6, %v656_v47  ;;  %v1779_v47 = vpack.c.bf16 %v1157_v45, %v1156_v44 }
 0x1e4   : > { %v665_v51 = vld [vmem:[#allocation2 + $0x1] ss:$2 sm:$0x1f]  ;;  %v662_v52 = vld [vmem:[#allocation2] ss:$2 sm:$0x1f] }
 0x1e5   : > { %1621 = vmatmul.mubr.msk.f32.vlgmr.msra.gmra.mrb[2].mxu1 %vm658_vm6, %v665_v51  ;;  %1628 = vmatmul.mubr.msk.f32.vlgmr.msra.gmra.mrb[8].mxu0 %vm658_vm6, %v662_v52  ;;  %v815_v53 = vld [vmem:[#allocation2 + $0x2] ss:$2 sm:$0x1f] }
 0x1e6   : > { %1738 = vmatpush3.bf16.msra.mxu1 %v1737_v50  ;;  %1634 = vmatprep.mubr.msk.f32.mxu1 %vm1818_vm0, %v1819_v4 }
 0x1e7   : > { %1745 = vmatprep.subr.bf16.mxu1 %v1817_v2  ;;  %1645 = vmatprep.mubr.msk.f32.mxu0 %vm1818_vm0, %v1819_v4 }
 0x1e8   : > { %1741 = vmatpush3.bf16.msra.mxu0 %v1740_v57 }
 0x1e9   : > { %1635 = vmatmul.mubr.msk.f32.vlgmr.msra.gmra.mrb[4].mxu1 %vm658_vm6, %v815_v53  ;;  %1742 = vmatprep.subr.bf16.mxu0 %v1817_v2 }
 0x1ea   : > { %1656 = vmatprep.mubr.msk.f32.mxu1 %vm1818_vm0, %v1819_v4  ;;  %1747 = vmatpush3.bf16.msra.mxu1 %v1746_v61  ;;  %v1782_v61 = vpack.c.bf16 %v1510_v60, %v1509_v59 }
 0x1eb   : > { %1748 = vmatprep.subr.bf16.mxu1 %v1817_v2 }
 0x1ec   : > { %1744 = vmatpush3.bf16.msra.mxu0 %v1743_v0 }
 0x1ed   : > { %1751 = vmatprep.subr.bf16.mxu0 %v1817_v2 }
 0x1ee   : > { %1750 = vmatpush3.bf16.msra.mxu1 %v1749_v1 }
 0x1ef   : > { %1757 = vmatprep.subr.bf16.mxu1 %v1817_v2 }
 0x2b8   : > { %v738_v3 = vpop.f32.mrb[2].mxu1  ;;  %v811_v5 = vpop.f32.mrb[8].mxu0 }
 0x2b9   : > { %v812_v6 = vadd.f32 %v811_v5, %v738_v3  ;;  %v1622_v7 = vpop.f32.mrb[3].mxu1  ;;  %v1629_v8 = vpop.f32.mrb[9].mxu0  ;;  %v1785_v3 = vpack.c.bf16 %v1512_v63, %v1511_v62  ;;  %v1513_v5 = vld [vmem:[%s2116_s5 + $0xa0] sm:$0xff] }
 0x2ba   : > { %v1515_v8 = vld [vmem:[%s2116_s5 + $0xb0] sm:$0xff] }
 0x2bc   : > { %v888_v9 = vpop.f32.mrb[4].mxu1 }
 0x2bd   : > { %v892_v11 = vadd.f32 %v888_v9, %v812_v6  ;;  %v1636_v12 = vpop.f32.mrb[5].mxu1  ;;  %v1514_v6 = vld [vmem:[%s2116_s5 + $0xa8] sm:$0xff] }
 0x2be   : > { %v1788_v7 = vpack.c.bf16 %v1514_v6, %v1513_v5 }
 0x2bf   : > { %v898_v13 = vadd.f32 %v1486_v10, %v892_v11 }
 0x2c1   : > { %v899_v14 = vmax.f32 %v898_v13, 0.0 }
 0x2c3   : > { %901 = vst.msk [vmem:[#allocation2] sm:$0x1f] %vm900_vm7, %v899_v14 }
 0x2ca   : > { %v907_v20 = vld [vmem:[#allocation2 + $0x1] sm:$0x7] }
 0x2cb   : > { %v902_v21 = vld [vmem:[#allocation2] sm:$0x7]  ;;  %1646 = vmatmul.mubr.msk.f32.vlgmr.msra.gmra.mrb[10].mxu0 %vm913_vm8, %v907_v20 }
 0x2cc   : > { %1657 = vmatmul.mubr.msk.f32.vlgmr.msra.gmra.mrb[6].mxu1 %vm913_vm8, %v902_v21  ;;  %1753 = vmatpush3.bf16.msra.mxu0 %v1752_v17  ;;  %v1060_v23 = vld [vmem:[#allocation2 + $0x2] sm:$0x7] }
 0x2cd   : > { %1667 = vmatprep.mubr.msk.f32.mxu0 %vm1818_vm0, %v1819_v4  ;;  %1754 = vmatprep.subr.bf16.mxu0 %v1817_v2  ;;  %v1399_v17 = vld [vmem:[%s2117_s6 + $0x4] sm:$0x1] }
 0x2ce   : > { %1686 = vmatprep.mubr.msk.f32.mxu1 %vm1818_vm0, %v1819_v4  ;;  %1759 = vmatpush3.bf16.msra.mxu1 %v1758_v26 }
 0x2cf   : > { %1760 = vmatprep.subr.bf16.mxu1 %v1817_v2 }
 0x2d0   : > { %1756 = vmatpush3.bf16.msra.mxu0 %v1755_v22 }
 0x2d1   : > { %1769 = vmatprep.subr.bf16.mxu0 %v1817_v2 }
 0x2d2   : > { %1762 = vmatpush3.bf16.msra.mxu1 %v1761_v32 }
 0x2d3   : > { %1668 = vmatmul.mubr.msk.f32.vlgmr.msra.gmra.mrb[12].mxu0 %vm913_vm8, %v1060_v23  ;;  %1763 = vmatprep.subr.bf16.mxu1 %v1817_v2 }
 0x2d4   : > { %1705 = vmatprep.mubr.msk.f32.mxu0 %vm1818_vm0, %v1819_v4  ;;  %1771 = vmatpush3.bf16.msra.mxu0 %v1770_v29 }
 0x2d5   : > { %1772 = vmatprep.subr.bf16.mxu0 %v1817_v2 }
 0x2d6   : > { %1765 = vmatpush3.bf16.msra.mxu1 %v1764_v38 }
 0x2d7   : > { %1766 = vmatprep.subr.bf16.mxu1 %v1817_v2 }
 0x2d8   : > { %1774 = vmatpush3.bf16.msra.mxu0 %v1773_v35 }
 0x2d9   : > { %1775 = vmatprep.subr.bf16.mxu0 %v1817_v2 }
 0x2da   : > { %1768 = vmatpush3.bf16.msra.mxu1 %v1767_v46 }
 0x2db   : > { %1781 = vmatprep.subr.bf16.mxu1 %v1817_v2 }
 0x2dc   : > { %1777 = vmatpush3.bf16.msra.mxu0 %v1776_v42 }
 0x2dd   : > { %1778 = vmatprep.subr.bf16.mxu0 %v1817_v2 }
 0x2e0   : > { %1780 = vmatpush3.bf16.msra.mxu0 %v1779_v47 }
 0x39e   : > { %v983_v48 = vpop.f32.mrb[10].mxu0 }
 0x39f   : > { %v1056_v49 = vpop.f32.mrb[6].mxu1  ;;  %v1647_v51 = vpop.f32.mrb[11].mxu0 }
 0x3a0   : > { %v1057_v50 = vadd.f32 %v1056_v49, %v983_v48  ;;  %v1658_v52 = vpop.f32.mrb[7].mxu1 }
 0x3a6   : > { %v1135_v53 = vpop.f32.mrb[12].mxu0 }
 0x3a7   : > { %v1139_v55 = vadd.f32 %v1135_v53, %v1057_v50  ;;  %v1669_v56 = vpop.f32.mrb[13].mxu0 }
 0x3a9   : > { %v1145_v57 = vadd.f32 %v1498_v54, %v1139_v55 }
 0x3ab   : > { %v1146_v58 = vmax.f32 %v1145_v57, 0.0 }
 0x3ad   : > { %1148 = vst.msk [vmem:[#allocation2] sm:$0x7] %vm1147_vm9, %v1146_v58 }
 0x3b4   : > { %v1158_v0 = vld [vmem:[#allocation2 + $0x1] sm:$0x1]  ;;  %v1149_v1 = vld [vmem:[#allocation2] sm:$0x1]  ;;  %v1315_v10 = vld [vmem:[#allocation2 + $0x2] sm:$0x1] }
 0x3b5   : > { %1687 = vmatmul.mubr.msk.f32.vlgmr.msra.gmra.mrb[8].mxu1 %vm1168_vm10, %v1158_v0  ;;  %1706 = vmatmul.mubr.msk.f32.vlgmr.msra.gmra.mrb[14].mxu0 %vm1168_vm10, %v1149_v1 }
 0x3b6   : > { %1783 = vmatpush3.bf16.msra.mxu1 %v1782_v61  ;;  %1724 = vmatprep.mubr.msk.f32.mxu1 %vm1818_vm0, %v1819_v4  ;;  %v1516_v4 = vld [vmem:[%s2116_s5 + $0xb8] sm:$0xff] }
 0x3b7   : > { %1784 = vmatprep.subr.bf16.mxu1 %v1817_v2  ;;  %v1791_v9 = vpack.c.bf16 %v1516_v4, %v1515_v8 }
 0x3ba   : > { %1786 = vmatpush3.bf16.msra.mxu1 %v1785_v3 }
 0x3bb   : > { %1787 = vmatprep.subr.bf16.mxu1 %v1817_v2 }
 0x3be   : > { %1789 = vmatpush3.bf16.msra.mxu1 %v1788_v7 }
 0x3bf   : > { %1790 = vmatprep.subr.bf16.mxu1 %v1817_v2  ;;  %v1402_v2 = vld [vmem:[%s2117_s6 + $0x5] sm:$0x1] }
 0x3c2   : > { %1792 = vmatpush3.bf16.msra.mxu1 %v1791_v9 }
 0x3c5   : > { %1725 = vmatmul.mubr.msk.f32.vlgmr.msra.gmra.mrb[10].mxu1 %vm1168_vm10, %v1315_v10 }
 0x488   : > { %v1238_v11 = vpop.f32.mrb[8].mxu1  ;;  %v1311_v12 = vpop.f32.mrb[14].mxu0 }
 0x489   : > { %v1312_v13 = vadd.f32 %v1311_v12, %v1238_v11  ;;  %v1688_v14 = vpop.f32.mrb[9].mxu1  ;;  %v1707_v15 = vpop.f32.mrb[15].mxu0 }
 0x498   : > { %v1394_v16 = vpop.f32.mrb[10].mxu1 }
 0x499   : > { %v1398_v18 = vadd.f32 %v1394_v16, %v1312_v13  ;;  %v1726_v19 = vpop.f32.mrb[11].mxu1 }
 0x49b   : > { %v1400_v20 = vadd.f32 %v1399_v17, %v1398_v18 }
 0x49d   : > { %v1401_v21 = vmax.f32 %v1400_v20, 0.0 }
 0x49f   : > { %v1404_v22 = vmul.f32 %v1402_v2, %v1401_v21 }
 0x4a1   : > { %v1406_v23 = vsel %vm1405_vm11, %v1404_v22, 0.0 }
 0x4a2   : > { %1407 = vadd.xlane.f32.xlu0 %v1406_v23 }
 0x52f   : > { %v1408_v25 = vpop.xlane.xlu0 %1407 }
 0x530   : > { %v1409_v26 = vadd.f32 %v1408_v25, %v1403_v24 }
 0x532   : > { %1411 = vst.msk [vmem:[%s274_s14] sm:$0x1] %vm1410_vm12, %v1409_v26 }
 0x533 PF: > { %s17_s24 = sadd.s32 1, %s1815_s24  }
 0x534   : > { %p14_p4 = scmp.ge.s32.totalorder %s17_s24, 4  }
 0x536   :  { %16 = sbr.rel (!%p14_p4) target bundleno = 1 (0x1), region = 91 }

</bundles_post_ra>
